<compile_context>
chip_gen: v6e
topology: v6e:2x2x1
jax: 0.10.0
libtpu: 0.0.40
codegen_flags: <defaults>
</compile_context>

<pallas_src>
import numpy as np
import jax
import jax.numpy as jnp
from jax.experimental import pallas as pl
from jax.experimental.pallas import tpu as pltpu

N_QUBITS = 3
N_LAYERS = 3
N_CLASSES = 2
DIM = 2 ** N_QUBITS  # 8


# ----------------------------------------------------------------------------
# Plain-numpy glue: build the fixed StronglyEntanglingLayers 8x8 unitary.
# (depends only on the deterministic trainable params, not on x)
# ----------------------------------------------------------------------------
def _rx(a):
    c, s = np.cos(a / 2), np.sin(a / 2)
    return np.array([[c, -1j * s], [-1j * s, c]], dtype=np.complex128)


def _ry(a):
    c, s = np.cos(a / 2), np.sin(a / 2)
    return np.array([[c, -s], [s, c]], dtype=np.complex128)


def _rz(a):
    return np.array([[np.exp(-1j * a / 2), 0.0], [0.0, np.exp(1j * a / 2)]],
                    dtype=np.complex128)


def _rot(phi, theta, omega):
    # qml.Rot(phi, theta, omega) = RZ(omega) @ RY(theta) @ RZ(phi)
    return _rz(omega) @ _ry(theta) @ _rz(phi)


def _kron3(g0, g1, g2):
    return np.kron(np.kron(g0, g1), g2)


def _cnot(control, target, n=N_QUBITS):
    u = np.zeros((2 ** n, 2 ** n), dtype=np.complex128)
    for k in range(2 ** n):
        bits = [(k >> (n - 1 - w)) & 1 for w in range(n)]
        if bits[control]:
            bits[target] ^= 1
        j = sum(b << (n - 1 - w) for w, b in enumerate(bits))
        u[j, k] = 1.0
    return u


def build_sel_unitary(params):
    """StronglyEntanglingLayers(params, wires=[0,1,2], ranges=[1,1,1]) as 8x8."""
    params = np.asarray(params, dtype=np.float64)
    u_total = np.eye(DIM, dtype=np.complex128)
    for l in range(N_LAYERS):
        rot = _kron3(_rot(*params[l, 0]), _rot(*params[l, 1]), _rot(*params[l, 2]))
        # entanglers for range=1: CNOT(0,1), CNOT(1,2), CNOT(2,0), in that order
        layer = _cnot(2, 0) @ _cnot(1, 2) @ _cnot(0, 1) @ rot
        u_total = layer @ u_total
    return u_total


# ----------------------------------------------------------------------------
# Pallas kernel (batch-on-lanes layout)
# ----------------------------------------------------------------------------
def qcircuit_kernel(xt_ref, m_ref, sgn_ref, o_ref):
    xt = xt_ref[...]               # (6, Bt) float32; rows = features, lanes = batch

    # Two full-width transcendental pushes for the whole tile (not 12 sparse ones)
    c = jnp.cos(0.5 * xt)          # (6, Bt)
    s = jnp.sin(0.5 * xt)          # (6, Bt)

    def qubit(rx_row, ry_row):
        # single-qubit state RY(ry) @ RX(rx) |0> as ((re0, im0), (re1, im1)),
        # each a (1, Bt) row
        ca, sa = c[rx_row:rx_row + 1, :], s[rx_row:rx_row + 1, :]
        cb, sb = c[ry_row:ry_row + 1, :], s[ry_row:ry_row + 1, :]
        v0 = (cb * ca, sb * sa)
        v1 = (sb * ca, -cb * sa)
        return (v0, v1)

    # wire 0: RX(x[5]), RY(x[3]); wire 1: RX(x[4]), RY(x[1]); wire 2: RX(x[0]), RY(x[2])
    q0 = qubit(5, 3)
    q1 = qubit(4, 1)
    q2 = qubit(0, 2)

    def cmul(a, b):
        ar, ai = a
        br, bi = b
        return (ar * br - ai * bi, ar * bi + ai * br)

    re_rows, im_rows = [], []
    for k in range(DIM):
        b0, b1, b2 = (k >> 2) & 1, (k >> 1) & 1, k & 1
        amp_r, amp_i = cmul(cmul(q0[b0], q1[b1]), q2[b2])
        re_rows.append(amp_r)
        im_rows.append(amp_i)
    # Stack along the sublane axis: (16, Bt) = [Re(psi); Im(psi)]
    psi = jnp.concatenate(re_rows + im_rows, axis=0)

    # Complex unitary application fused into ONE real matmul:
    #   [phi_r; phi_i] = [[Re U, -Im U], [Im U, Re U]] @ [psi_r; psi_i]
    phi = jnp.dot(m_ref[...], psi, preferred_element_type=jnp.float32)  # (16, Bt)
    phi_r = phi[:DIM, :]
    phi_i = phi[DIM:, :]
    probs = phi_r * phi_r + phi_i * phi_i                               # (8, Bt)

    # <Z_0>, <Z_1> as a single small matmul against the precomputed sign matrix
    o_ref[...] = jnp.dot(sgn_ref[...], probs,
                         preferred_element_type=jnp.float32)            # (2, Bt)


def _round_up(n, m):
    return ((n + m - 1) // m) * m


def model_forward(x, u_sel, *, block_b=8192):
    """Equivalent of Model.forward: x (B, >=6) float32 -> (B, 2) float32."""
    x = jnp.asarray(x, jnp.float32)[:, :6]
    b = x.shape[0]

    ur = np.asarray(u_sel).real.astype(np.float32)
    ui = np.asarray(u_sel).imag.astype(np.float32)
    # 16x16 real block matrix for the fused complex matmul
    m = np.block([[ur, -ui], [ui, ur]]).astype(np.float32)              # (16, 16)
    # (2, 8) Z-eigenvalue sign matrix: wire 0 = bit 2 (MSB), wire 1 = bit 1
    k = np.arange(DIM)
    sgn = np.stack([1 - 2 * ((k >> 2) & 1),
                    1 - 2 * ((k >> 1) & 1)]).astype(np.float32)         # (2, 8)

    # Tile the batch: lane-aligned (multiple of 128), modest VMEM footprint
    # (sized against v7x's smaller VMEM; ~7 live f32 (<=16, Bt) intermediates).
    bt = min(block_b, _round_up(b, 128))
    b_pad = _round_up(b, bt)

    xt = jnp.pad(x.T, ((0, 0), (0, b_pad - b)))                         # (6, B_pad)

    out_t = pl.pallas_call(
        qcircuit_kernel,
        out_shape=jax.ShapeDtypeStruct((N_CLASSES, b_pad), jnp.float32),
        grid=(b_pad // bt,),
        in_specs=[
            pl.BlockSpec((6, bt), lambda i: (0, i)),                    # streamed
            pl.BlockSpec((2 * DIM, 2 * DIM), lambda i: (0, 0)),         # resident
            pl.BlockSpec((N_CLASSES, DIM), lambda i: (0, 0)),           # resident
        ],
        out_specs=pl.BlockSpec((N_CLASSES, bt), lambda i: (0, i)),
        compiler_params=pltpu.CompilerParams(
            dimension_semantics=("parallel",)),                         # v7x megacore
    )(xt, jnp.asarray(m), jnp.asarray(sgn))

    return out_t[:, :b].T                                               # (B, 2)


# ----------------------------------------------------------------------------
# Pure-numpy reference (statevector simulation of the same circuit).
# ----------------------------------------------------------------------------
def reference_forward(x, params):
    x = np.asarray(x, np.float64)
    u_sel = build_sel_unitary(params)
    out = np.zeros((x.shape[0], N_CLASSES), dtype=np.float64)
    for b in range(x.shape[0]):
        g0 = _ry(x[b, 3]) @ _rx(x[b, 5])
        g1 = _ry(x[b, 1]) @ _rx(x[b, 4])
        g2 = _ry(x[b, 2]) @ _rx(x[b, 0])
        psi = _kron3(g0, g1, g2)[:, 0]  # initial state |000>
        phi = u_sel @ psi
        probs = np.abs(phi) ** 2
        out[b, 0] = sum(probs[k] * (1 - 2 * ((k >> 2) & 1)) for k in range(DIM))
        out[b, 1] = sum(probs[k] * (1 - 2 * ((k >> 1) & 1)) for k in range(DIM))
    return out


if __name__ == "__main__":
    key = jax.random.PRNGKey(0)
    kx, kp = jax.random.split(key)

    batch = 8
    x = jax.random.uniform(kx, (batch, 6), jnp.float32,
                           minval=-np.pi, maxval=np.pi)
    # TorchLayer default init: uniform(0, 2*pi) over weight_shapes['params']
    params = np.asarray(
        jax.random.uniform(kp, (N_LAYERS, N_QUBITS, 3), jnp.float32,
                           minval=0.0, maxval=2.0 * np.pi),
        dtype=np.float64)

    u_sel = build_sel_unitary(params)
    out = model_forward(x, u_sel)
    out = jax.block_until_ready(out)

    ref = reference_forward(np.asarray(x), params)
    np.testing.assert_allclose(np.asarray(out), ref, atol=2e-4, rtol=2e-4)

    print("KERNEL_OK")
</pallas_src>

<mosaic_0001>
module attributes {stable_mosaic.version = 11 : i64} {
  func.func @qcircuit_kernel(%arg0: i32, %arg1: memref<6x128xf32, #tpu.memory_space<vmem>>, %arg2: memref<16x16xf32, #tpu.memory_space<vmem>>, %arg3: memref<2x8xf32, #tpu.memory_space<vmem>>, %arg4: memref<2x128xf32, #tpu.memory_space<vmem>>) attributes {dimension_semantics = [#tpu.dimension_semantics<parallel>], iteration_bounds = array<i64: 1>, scalar_prefetch = 0 : i64, scratch_operands = 0 : i64, tpu.core_type = #tpu.core_type<tc>, window_params = [{transform_indices = @transform_0, window_bounds = array<i64: 6, 128>}, {pipeline_mode = #tpu.pipeline_mode<synchronous>, transform_indices = @transform_1, window_bounds = array<i64: 16, 16>}, {pipeline_mode = #tpu.pipeline_mode<synchronous>, transform_indices = @transform_2, window_bounds = array<i64: 2, 8>}, {transform_indices = @transform_3, window_bounds = array<i64: 2, 128>}]} {
    %c0 = arith.constant 0 : index
    %c0_0 = arith.constant 0 : index
    %0 = vector.load %arg1[%c0, %c0_0] : memref<6x128xf32, #tpu.memory_space<vmem>>, vector<6x128xf32>
    %cst = arith.constant 5.000000e-01 : f32
    %1 = vector.broadcast %cst : f32 to vector<6x128xf32>
    %2 = arith.mulf %1, %0 : vector<6x128xf32>
    %3 = math.cos %2 : vector<6x128xf32>
    %cst_1 = arith.constant 5.000000e-01 : f32
    %4 = vector.broadcast %cst_1 : f32 to vector<6x128xf32>
    %5 = arith.mulf %4, %0 : vector<6x128xf32>
    %6 = math.sin %5 : vector<6x128xf32>
    %7 = vector.extract_strided_slice %3 {offsets = [5, 0], sizes = [1, 128], strides = [1, 1]} : vector<6x128xf32> to vector<1x128xf32>
    %8 = vector.extract_strided_slice %6 {offsets = [5, 0], sizes = [1, 128], strides = [1, 1]} : vector<6x128xf32> to vector<1x128xf32>
    %9 = vector.extract_strided_slice %3 {offsets = [3, 0], sizes = [1, 128], strides = [1, 1]} : vector<6x128xf32> to vector<1x128xf32>
    %10 = vector.extract_strided_slice %6 {offsets = [3, 0], sizes = [1, 128], strides = [1, 1]} : vector<6x128xf32> to vector<1x128xf32>
    %11 = arith.mulf %9, %7 : vector<1x128xf32>
    %12 = arith.mulf %10, %8 : vector<1x128xf32>
    %13 = arith.mulf %10, %7 : vector<1x128xf32>
    %cst_2 = arith.constant 0.000000e+00 : f32
    %14 = vector.broadcast %cst_2 : f32 to vector<1x128xf32>
    %15 = arith.subf %14, %9 : vector<1x128xf32>
    %16 = arith.mulf %15, %8 : vector<1x128xf32>
    %17 = vector.extract_strided_slice %3 {offsets = [4, 0], sizes = [1, 128], strides = [1, 1]} : vector<6x128xf32> to vector<1x128xf32>
    %18 = vector.extract_strided_slice %6 {offsets = [4, 0], sizes = [1, 128], strides = [1, 1]} : vector<6x128xf32> to vector<1x128xf32>
    %19 = vector.extract_strided_slice %3 {offsets = [1, 0], sizes = [1, 128], strides = [1, 1]} : vector<6x128xf32> to vector<1x128xf32>
    %20 = vector.extract_strided_slice %6 {offsets = [1, 0], sizes = [1, 128], strides = [1, 1]} : vector<6x128xf32> to vector<1x128xf32>
    %21 = arith.mulf %19, %17 : vector<1x128xf32>
    %22 = arith.mulf %20, %18 : vector<1x128xf32>
    %23 = arith.mulf %20, %17 : vector<1x128xf32>
    %cst_3 = arith.constant 0.000000e+00 : f32
    %24 = vector.broadcast %cst_3 : f32 to vector<1x128xf32>
    %25 = arith.subf %24, %19 : vector<1x128xf32>
    %26 = arith.mulf %25, %18 : vector<1x128xf32>
    %27 = vector.extract_strided_slice %3 {offsets = [0, 0], sizes = [1, 128], strides = [1, 1]} : vector<6x128xf32> to vector<1x128xf32>
    %28 = vector.extract_strided_slice %6 {offsets = [0, 0], sizes = [1, 128], strides = [1, 1]} : vector<6x128xf32> to vector<1x128xf32>
    %29 = vector.extract_strided_slice %3 {offsets = [2, 0], sizes = [1, 128], strides = [1, 1]} : vector<6x128xf32> to vector<1x128xf32>
    %30 = vector.extract_strided_slice %6 {offsets = [2, 0], sizes = [1, 128], strides = [1, 1]} : vector<6x128xf32> to vector<1x128xf32>
    %31 = arith.mulf %29, %27 : vector<1x128xf32>
    %32 = arith.mulf %30, %28 : vector<1x128xf32>
    %33 = arith.mulf %30, %27 : vector<1x128xf32>
    %cst_4 = arith.constant 0.000000e+00 : f32
    %34 = vector.broadcast %cst_4 : f32 to vector<1x128xf32>
    %35 = arith.subf %34, %29 : vector<1x128xf32>
    %36 = arith.mulf %35, %28 : vector<1x128xf32>
    %37 = arith.mulf %11, %21 : vector<1x128xf32>
    %38 = arith.mulf %12, %22 : vector<1x128xf32>
    %39 = arith.subf %37, %38 : vector<1x128xf32>
    %40 = arith.mulf %11, %22 : vector<1x128xf32>
    %41 = arith.mulf %12, %21 : vector<1x128xf32>
    %42 = arith.addf %40, %41 : vector<1x128xf32>
    %43 = arith.mulf %39, %31 : vector<1x128xf32>
    %44 = arith.mulf %42, %32 : vector<1x128xf32>
    %45 = arith.subf %43, %44 : vector<1x128xf32>
    %46 = arith.mulf %39, %32 : vector<1x128xf32>
    %47 = arith.mulf %42, %31 : vector<1x128xf32>
    %48 = arith.addf %46, %47 : vector<1x128xf32>
    %49 = arith.mulf %11, %21 : vector<1x128xf32>
    %50 = arith.mulf %12, %22 : vector<1x128xf32>
    %51 = arith.subf %49, %50 : vector<1x128xf32>
    %52 = arith.mulf %11, %22 : vector<1x128xf32>
    %53 = arith.mulf %12, %21 : vector<1x128xf32>
    %54 = arith.addf %52, %53 : vector<1x128xf32>
    %55 = arith.mulf %51, %33 : vector<1x128xf32>
    %56 = arith.mulf %54, %36 : vector<1x128xf32>
    %57 = arith.subf %55, %56 : vector<1x128xf32>
    %58 = arith.mulf %51, %36 : vector<1x128xf32>
    %59 = arith.mulf %54, %33 : vector<1x128xf32>
    %60 = arith.addf %58, %59 : vector<1x128xf32>
    %61 = arith.mulf %11, %23 : vector<1x128xf32>
    %62 = arith.mulf %12, %26 : vector<1x128xf32>
    %63 = arith.subf %61, %62 : vector<1x128xf32>
    %64 = arith.mulf %11, %26 : vector<1x128xf32>
    %65 = arith.mulf %12, %23 : vector<1x128xf32>
    %66 = arith.addf %64, %65 : vector<1x128xf32>
    %67 = arith.mulf %63, %31 : vector<1x128xf32>
    %68 = arith.mulf %66, %32 : vector<1x128xf32>
    %69 = arith.subf %67, %68 : vector<1x128xf32>
    %70 = arith.mulf %63, %32 : vector<1x128xf32>
    %71 = arith.mulf %66, %31 : vector<1x128xf32>
    %72 = arith.addf %70, %71 : vector<1x128xf32>
    %73 = arith.mulf %11, %23 : vector<1x128xf32>
    %74 = arith.mulf %12, %26 : vector<1x128xf32>
    %75 = arith.subf %73, %74 : vector<1x128xf32>
    %76 = arith.mulf %11, %26 : vector<1x128xf32>
    %77 = arith.mulf %12, %23 : vector<1x128xf32>
    %78 = arith.addf %76, %77 : vector<1x128xf32>
    %79 = arith.mulf %75, %33 : vector<1x128xf32>
    %80 = arith.mulf %78, %36 : vector<1x128xf32>
    %81 = arith.subf %79, %80 : vector<1x128xf32>
    %82 = arith.mulf %75, %36 : vector<1x128xf32>
    %83 = arith.mulf %78, %33 : vector<1x128xf32>
    %84 = arith.addf %82, %83 : vector<1x128xf32>
    %85 = arith.mulf %13, %21 : vector<1x128xf32>
    %86 = arith.mulf %16, %22 : vector<1x128xf32>
    %87 = arith.subf %85, %86 : vector<1x128xf32>
    %88 = arith.mulf %13, %22 : vector<1x128xf32>
    %89 = arith.mulf %16, %21 : vector<1x128xf32>
    %90 = arith.addf %88, %89 : vector<1x128xf32>
    %91 = arith.mulf %87, %31 : vector<1x128xf32>
    %92 = arith.mulf %90, %32 : vector<1x128xf32>
    %93 = arith.subf %91, %92 : vector<1x128xf32>
    %94 = arith.mulf %87, %32 : vector<1x128xf32>
    %95 = arith.mulf %90, %31 : vector<1x128xf32>
    %96 = arith.addf %94, %95 : vector<1x128xf32>
    %97 = arith.mulf %13, %21 : vector<1x128xf32>
    %98 = arith.mulf %16, %22 : vector<1x128xf32>
    %99 = arith.subf %97, %98 : vector<1x128xf32>
    %100 = arith.mulf %13, %22 : vector<1x128xf32>
    %101 = arith.mulf %16, %21 : vector<1x128xf32>
    %102 = arith.addf %100, %101 : vector<1x128xf32>
    %103 = arith.mulf %99, %33 : vector<1x128xf32>
    %104 = arith.mulf %102, %36 : vector<1x128xf32>
    %105 = arith.subf %103, %104 : vector<1x128xf32>
    %106 = arith.mulf %99, %36 : vector<1x128xf32>
    %107 = arith.mulf %102, %33 : vector<1x128xf32>
    %108 = arith.addf %106, %107 : vector<1x128xf32>
    %109 = arith.mulf %13, %23 : vector<1x128xf32>
    %110 = arith.mulf %16, %26 : vector<1x128xf32>
    %111 = arith.subf %109, %110 : vector<1x128xf32>
    %112 = arith.mulf %13, %26 : vector<1x128xf32>
    %113 = arith.mulf %16, %23 : vector<1x128xf32>
    %114 = arith.addf %112, %113 : vector<1x128xf32>
    %115 = arith.mulf %111, %31 : vector<1x128xf32>
    %116 = arith.mulf %114, %32 : vector<1x128xf32>
    %117 = arith.subf %115, %116 : vector<1x128xf32>
    %118 = arith.mulf %111, %32 : vector<1x128xf32>
    %119 = arith.mulf %114, %31 : vector<1x128xf32>
    %120 = arith.addf %118, %119 : vector<1x128xf32>
    %121 = arith.mulf %13, %23 : vector<1x128xf32>
    %122 = arith.mulf %16, %26 : vector<1x128xf32>
    %123 = arith.subf %121, %122 : vector<1x128xf32>
    %124 = arith.mulf %13, %26 : vector<1x128xf32>
    %125 = arith.mulf %16, %23 : vector<1x128xf32>
    %126 = arith.addf %124, %125 : vector<1x128xf32>
    %127 = arith.mulf %123, %33 : vector<1x128xf32>
    %128 = arith.mulf %126, %36 : vector<1x128xf32>
    %129 = arith.subf %127, %128 : vector<1x128xf32>
    %130 = arith.mulf %123, %36 : vector<1x128xf32>
    %131 = arith.mulf %126, %33 : vector<1x128xf32>
    %132 = arith.addf %130, %131 : vector<1x128xf32>
    %133 = tpu.concatenate %45, %57, %69, %81, %93, %105, %117, %129, %48, %60, %72, %84, %96, %108, %120, %132 in 0 : vector<1x128xf32>, vector<1x128xf32>, vector<1x128xf32>, vector<1x128xf32>, vector<1x128xf32>, vector<1x128xf32>, vector<1x128xf32>, vector<1x128xf32>, vector<1x128xf32>, vector<1x128xf32>, vector<1x128xf32>, vector<1x128xf32>, vector<1x128xf32>, vector<1x128xf32>, vector<1x128xf32>, vector<1x128xf32> -> vector<16x128xf32>
    %c0_5 = arith.constant 0 : index
    %c0_6 = arith.constant 0 : index
    %134 = vector.load %arg2[%c0_5, %c0_6] : memref<16x16xf32, #tpu.memory_space<vmem>>, vector<16x16xf32>
    %cst_7 = arith.constant dense<0.000000e+00> : vector<16x128xf32>
    %135 = tpu.matmul %134, %133, %cst_7 {dimension_numbers = #tpu.dot_dimension_numbers<[1], [0], [0], [1], [0, 0, 1, 1], [], []>} : vector<16x16xf32>, vector<16x128xf32>, vector<16x128xf32> -> vector<16x128xf32>
    %136 = vector.extract_strided_slice %135 {offsets = [0, 0], sizes = [8, 128], strides = [1, 1]} : vector<16x128xf32> to vector<8x128xf32>
    %137 = vector.extract_strided_slice %135 {offsets = [8, 0], sizes = [8, 128], strides = [1, 1]} : vector<16x128xf32> to vector<8x128xf32>
    %138 = arith.mulf %136, %136 : vector<8x128xf32>
    %139 = arith.mulf %137, %137 : vector<8x128xf32>
    %140 = arith.addf %138, %139 : vector<8x128xf32>
    %c0_8 = arith.constant 0 : index
    %c0_9 = arith.constant 0 : index
    %141 = vector.load %arg3[%c0_8, %c0_9] : memref<2x8xf32, #tpu.memory_space<vmem>>, vector<2x8xf32>
    %cst_10 = arith.constant dense<0.000000e+00> : vector<2x128xf32>
    %142 = tpu.matmul %141, %140, %cst_10 {dimension_numbers = #tpu.dot_dimension_numbers<[1], [0], [0], [1], [0, 0, 1, 1], [], []>} : vector<2x8xf32>, vector<8x128xf32>, vector<2x128xf32> -> vector<2x128xf32>
    %c0_11 = arith.constant 0 : index
    %c0_12 = arith.constant 0 : index
    %143 = vector.load %arg4[%c0_11, %c0_12] : memref<2x128xf32, #tpu.memory_space<vmem>>, vector<2x128xf32>
    tpu.vector_store %arg4[%c0_11, %c0_12], %142 {strides = array<i32>} : memref<2x128xf32, #tpu.memory_space<vmem>>, vector<2x128xf32>,
    return
  }
  func.func @transform_0(%arg0: i32) -> (i32, i32) {
    %c0_i32 = arith.constant 0 : i32
    %c0_i32_0 = arith.constant 0 : i32
    return %c0_i32, %arg0 : i32, i32
  }
  func.func @transform_1(%arg0: i32) -> (i32, i32) {
    %c0_i32 = arith.constant 0 : i32
    %c0_i32_0 = arith.constant 0 : i32
    %c0_i32_1 = arith.constant 0 : i32
    return %c0_i32, %c0_i32_0 : i32, i32
  }
  func.func @transform_2(%arg0: i32) -> (i32, i32) {
    %c0_i32 = arith.constant 0 : i32
    %c0_i32_0 = arith.constant 0 : i32
    %c0_i32_1 = arith.constant 0 : i32
    return %c0_i32, %c0_i32_0 : i32, i32
  }
  func.func @transform_3(%arg0: i32) -> (i32, i32) {
    %c0_i32 = arith.constant 0 : i32
    %c0_i32_0 = arith.constant 0 : i32
    return %c0_i32, %arg0 : i32, i32
  }
}

</mosaic_0001>

<bundles_post_ra>
// kernel: tpu_custom_call.1
= control target key start
LH: loop header
LB: loop body
LE: loop exit
PB: predicated region body
PF: predicated region fallthrough
CT: control target
= control target key end

     0   :  { %8 = vsyncpa [#allocation3], 0  ;;  %s853_s0 = inlined_call_operand.hbm [shape: f32[6,128], index: 0, kind: input, shape index: {}]   ;;  %s854_s1 = inlined_call_operand.hbm [shape: f32[16,16], index: 1, kind: input, shape index: {}]   ;;  %s855_s2 = inlined_call_operand.vmem [shape: f32[2,8], index: 2, kind: input, shape index: {}]   ;;  %s856_s3 = inlined_call_operand.hbm [shape: f32[2,128], index: 3, kind: output, shape index: {}]  }
   0x1   :  { %9 = vsyncpa [#allocation6], 0 }
   0x2   :  { %10 = vsyncpa [#allocation4], 0  ;;  %s731_s12 = smov [#allocation2]   ;;  %s732_s14 = smov [#allocation5]  }
   0x3   :  { %s17_s13 = sshll.u32 %s731_s12, 4  ;;  %s26_s15 = sshll.u32 %s732_s14, 4  ;;  %s18_s13 = int_to_ptr.vmem [resolvable:$true] %s17_s13  ;;  %s27_s15 = int_to_ptr.vmem [resolvable:$true] %s26_s15 }
   0x4   :  { %s673_s16 = scalar_lea.vmem %s18_s13, 128  ;;  %p678_p1 = scmp.lt.s32.totalorder %s18_s13, %s18_s13 }
   0x5   :  { %p674_p0 = scmp.ne.s32.totalorder %s18_s13, %s673_s16  ;;  %p679_p2 = scmp.lt.s32.totalorder %s673_s16, %s673_s16 }
   0x7   :  { %p680_p3 = por %p679_p2, %p678_p1 }
   0x9   :  { %p681_p4 = pnand %p680_p3, %p674_p0 }
   0xb   :  { %684 = shalt.err (!%p681_p4)
}
   0xc   :  { %20 = dma.hbm_to_vmem [thread:$0]  %s853_s0, 128, %s18_s13, [#allocation3]  }
   0xd   :  { %s693_s19 = scalar_lea.vmem %s27_s15, 256  ;;  %p698_p6 = scmp.lt.s32.totalorder %s27_s15, %s27_s15 }
   0xe   :  { %p694_p5 = scmp.ne.s32.totalorder %s27_s15, %s693_s19  ;;  %p699_p7 = scmp.lt.s32.totalorder %s693_s19, %s693_s19 }
  0x10   :  { %p700_p8 = por %p699_p7, %p698_p6 }
  0x12   :  { %p701_p9 = pnand %p700_p8, %p694_p5 }
  0x14   :  { %704 = shalt.err (!%p701_p9)
}
  0x15   :  { %s733_s20 = smov 128   ;;  %s734_s21 = smov 8  }
  0x16   :  { %32 = dma.hbm_to_vmem [thread:$0]  %s854_s1, 256, %s27_s15, [#allocation6], %s733_s20, %s733_s20, %s734_s21  }
  0x17   :  { %725 = dma.done.wait [#allocation3], 128  }
  0x18   :  { %726 = vsyncadd [#allocation3], 4294967168 }
  0x19   :  { %727 = dma.done.wait [#allocation6], 256  }
  0x1a   :  { %728 = vsyncadd [#allocation6], 4294967040  ;;  %vm438_vm0 = vcmask 130048   ;;  %v41_v0 = vld [vmem:[#allocation2] sm:$0x3f]  ;;  %v436_v1 = vld [vmem:[#allocation5] sm:$0xff] }
  0x1b   :  { %v770_v2 = vmul.f32 0.5, %v41_v0  ;;  %636 = vmatprep.mubr.msk.f32.mxu0 %vm438_vm0, %v436_v1  ;;  %v735_v14 = vmov 683565275   ;;  %v736_v16 = vmov 2475754826   ;;  %s743_s24 = smov [#allocation7]  }
  0x1c   :  { %v737_v18 = vmov 2131351028   ;;  %v738_v20 = vmov 2102212464   ;;  %v739_v22 = vmov 920167782  }
  0x1d   :  { %v46_v3 = vand.u32 2139095040, %v770_v2  ;;  %v43_v5 = vand.u32 2147483647, %v770_v2  ;;  %v740_v29 = vmov 1326507024   ;;  %vm45_vm8 = vcmp.lt.s32.totalorder %v770_v2, 0 }
  0x1e   :  { %s605_s25 = sshll.u32 %s743_s24, 4  ;;  %s606_s25 = int_to_ptr.vmem [resolvable:$true] %s605_s25 }
  0x1f   :  { %v47_v4 = vshrl.u32 %v46_v3, 23  ;;  %v50_v8 = vand.u32 8388607, %v43_v5  ;;  %vm44_vm9 = vcmp.le.f32.partialorder %v43_v5, 0.7853982  ;;  %s705_s26 = scalar_lea.vmem %s606_s25, 32  ;;  %p710_p11 = scmp.lt.s32.totalorder %s606_s25, %s606_s25 }
  0x20   :  { %p706_p10 = scmp.ne.s32.totalorder %s606_s25, %s705_s26  ;;  %p711_p12 = scmp.lt.s32.totalorder %s705_s26, %s705_s26 }
  0x21   :  { %v615_v6 = vadd.s32 4294967169, %v47_v4  ;;  %v51_v11 = vor.u32 8388608, %v50_v8 }
  0x22   :  { %p712_p13 = por %p711_p12, %p710_p11 }
  0x23   :  { %v53_v7 = vadd.s32 1, %v615_v6  ;;  %v91_v31 = vshll.u32 %v51_v11, 8 }
  0x24   :  { %p713_p0 = pnand %p712_p13, %p706_p10 }
  0x25   :  { %vm54_vm1 = vcmp.gt.s32.totalorder %v53_v7, 0 }
  0x26   :  { %v55_v9 = vsel %vm54_vm1, %v53_v7, 0  ;;  %vm135_vm1 = vweird.f32 %v770_v2 }
  0x27   :  { %v57_v10 = vand.u32 31, %v55_v9  ;;  %v56_v12 = vshrl.u32 %v55_v9, 5 }
  0x29   :  { %v58_v13 = vsub.s32 32, %v57_v10  ;;  %v60_v15 = vshll.u32 %v735_v14, %v57_v10  ;;  %v63_v17 = vshll.u32 %v736_v16, %v57_v10  ;;  %v66_v19 = vshll.u32 %v737_v18, %v57_v10 }
  0x2a   :  { %v69_v21 = vshll.u32 %v738_v20, %v57_v10  ;;  %v72_v23 = vshll.u32 %v739_v22, %v57_v10  ;;  %vm75_vm2 = vcmp.lt.s32.totalorder %v56_v12, 1  ;;  %vm78_vm3 = vcmp.lt.s32.totalorder %v56_v12, 4 }
  0x2b   :  { %v59_v24 = vshrl.u32 %v735_v14, %v58_v13  ;;  %v61_v25 = vshrl.u32 %v736_v16, %v58_v13  ;;  %v64_v26 = vshrl.u32 %v737_v18, %v58_v13  ;;  %v67_v27 = vshrl.u32 %v738_v20, %v58_v13 }
  0x2c   :  { %v70_v28 = vshrl.u32 %v739_v22, %v58_v13  ;;  %v73_v30 = vshrl.u32 %v740_v29, %v58_v13  ;;  %vm76_vm4 = vcmp.lt.s32.totalorder %v56_v12, 2  ;;  %vm77_vm5 = vcmp.lt.s32.totalorder %v56_v12, 3 }
  0x2d   :  { %v62_v32 = vor.u32 %v61_v25, %v60_v15  ;;  %v65_v33 = vor.u32 %v64_v26, %v63_v17  ;;  %v68_v34 = vor.u32 %v67_v27, %v66_v19 }
  0x2e   :  { %v71_v35 = vor.u32 %v70_v28, %v69_v21  ;;  %v74_v36 = vor.u32 %v73_v30, %v72_v23 }
  0x2f   :  { %v79_v37 = vsel %vm75_vm2, %v59_v24, %v62_v32  ;;  %v80_v38 = vsel %vm78_vm3, %v68_v34, 2102212464  ;;  %v83_v39 = vsel %vm75_vm2, %v62_v32, %v65_v33  ;;  %v87_v40 = vsel %vm75_vm2, %v65_v33, %v68_v34 }
  0x30   :  { %v81_v41 = vsel %vm77_vm5, %v65_v33, %v80_v38  ;;  %v84_v42 = vsel %vm78_vm3, %v71_v35, 920167782  ;;  %v88_v43 = vsel %vm78_vm3, %v74_v36, 1326507024  ;;  %vm415_vm2 = vcmask 1040384  }
  0x31   :  { %v85_v44 = vsel %vm77_vm5, %v68_v34, %v84_v42  ;;  %v89_v45 = vsel %vm77_vm5, %v71_v35, %v88_v43  ;;  %v82_v46 = vsel %vm76_vm4, %v79_v37, %v81_v41  ;;  %vm417_vm3 = vcmask 1041408  }
  0x32   :  { %v86_v47 = vsel %vm76_vm4, %v83_v39, %v85_v44  ;;  %v90_v48 = vsel %vm76_vm4, %v87_v40, %v89_v45  ;;  %v98_v53 = vmul.u32 %v91_v31, %v82_v46  ;;  %vm419_vm4 = vcmask 1042432  }
  0x33   :  { %v777_v49 = vmul.u32.u64.low %v91_v31, %v90_v48  ;;  %v778_v50 = vmul.u32.u64.high %v91_v31, %v90_v48, %v777_v49  ;;  %v780_v51 = vmul.u32.u64.low %v91_v31, %v86_v47  ;;  %v781_v52 = vmul.u32.u64.high %v91_v31, %v86_v47, %v780_v51 }
  0x34   :  { %vm421_vm5 = vcmask 1043456  }
  0x35   :  { %vm100_vm6 = vc.u32 %v778_v50, %v780_v51  ;;  %v101_v54 = vadd.s32 1, %v781_v52  ;;  %v99_v1 = vadd.s32 %v780_v51, %v778_v50 }
  0x37   :  { %v102_v55 = vsel %vm100_vm6, %v101_v54, %v781_v52  ;;  %vm423_vm6 = vcmask 1044480  }
  0x38   :  { %v103_v56 = vadd.s32 %v102_v55, %v98_v53 }
  0x3a   :  { %v104_v57 = vadd.s32 536870912, %v103_v56 }
  0x3c   :  { %v105_v58 = vshrl.u32 %v104_v57, 30 }
  0x3e   :  { %v106_v59 = vshll.u32 %v105_v58, 30  ;;  %v129_v16 = vsub.s32 4, %v105_v58 }
  0x40   :  { %v107_v60 = vsub.s32 %v103_v56, %v106_v59  ;;  %v130_v19 = vsel %vm45_vm8, %v129_v16, %v105_v58 }
  0x41   :  { %v132_v21 = vsel %vm44_vm9, 0, %v130_v19 }
  0x42   :  { %v109_v61 = vsub.s32 0, %v107_v60  ;;  %v239_v22 = vadd.s32 3, %v132_v21  ;;  %v136_v23 = vand.u32 3, %v132_v21 }
  0x44   :  { %v616_v62 = vmin.u32 %v109_v61, %v107_v60  ;;  %v240_v24 = vand.u32 3, %v239_v22  ;;  %vm141_vm10 = vcmp.eq.s32.totalorder %v136_v23, 2  ;;  %vm138_vm12 = vcmp.eq.s32.totalorder %v136_v23, 0 }
  0x45   :  { %vm137_vm14 = vcmp.lt.s32.totalorder %v136_v23, 2 }
  0x46   :  { %v111_v63 = vclz %v616_v62  ;;  %vm245_vm11 = vcmp.eq.s32.totalorder %v240_v24, 2  ;;  %vm242_vm13 = vcmp.eq.s32.totalorder %v240_v24, 0  ;;  %vm241_vm15 = vcmp.lt.s32.totalorder %v240_v24, 2 }
  0x48   :  { %v617_v0 = vadd.s32 4294967294, %v111_v63 }
  0x4a   :  { %vm618_vm7 = vcmp.lt.s32.totalorder %v617_v0, 0 }
  0x4b   :  { %v114_v3 = vsel %vm618_vm7, 0, %v617_v0  ;;  %vm425_vm7 = vcmask 1045504  }
  0x4c   :  { %v115_v4 = vsub.s32 32, %v114_v3  ;;  %v116_v6 = vshll.u32 %v107_v60, %v114_v3  ;;  %v119_v7 = vsub.s32 4294967266, %v114_v3 }
  0x4e   :  { %v117_v8 = vshrl.u32 %v99_v1, %v115_v4  ;;  %v120_v9 = vadd.s32 127, %v119_v7 }
  0x50   :  { %v118_v10 = vor.u32 %v117_v8, %v116_v6  ;;  %v121_v11 = vshll.u32 %v120_v9, 23 }
  0x52   :  { %v122_v12 = vor.u32 4788187, %v121_v11  ;;  %v125_v13 = vcvt.s32.f32 %v118_v10 }
  0x54   :  { %v123_v14 = vand.u32 2147483647, %v122_v12 }
  0x56   :  { %v126_v15 = vmul.f32 %v125_v13, %v123_v14 }
  0x58   :  { %v127_v17 = vxor.u32 2147483648, %v126_v15 }
  0x5a   :  { %v128_v18 = vsel %vm45_vm8, %v127_v17, %v126_v15  ;;  %vm427_vm8 = vcmask 1046528  }
  0x5b   :  { %v131_v20 = vsel %vm44_vm9, %v770_v2, %v128_v18  ;;  %vm742_vm9 = vmmov 0  }
  0x5c   :  { %661 = vcosq.f32 %v131_v20 }
  0x5d   :  { %663 = vsinq.f32 %v131_v20 }
  0x69   :  { %v662_v25 = vpop.eup %661 }
  0x6a   :  { %v664_v26 = vpop.eup %663  ;;  %v142_v27 = vxor.u32 2147483648, %v662_v25 }
  0x6b   :  { %v139_v5 = vxor.u32 2147483648, %v664_v26 }
  0x6c   :  { %v143_v28 = vsel %vm141_vm10, %v142_v27, %v664_v26  ;;  %v247_v29 = vsel %vm245_vm11, %v142_v27, %v664_v26  ;;  %vm524_vm10 = vcmask 64512  }
  0x6d   :  { %v140_v30 = vsel %vm138_vm12, %v662_v25, %v139_v5  ;;  %v244_v31 = vsel %vm242_vm13, %v662_v25, %v139_v5 }
  0x6e   :  { %v144_v32 = vsel %vm137_vm14, %v140_v30, %v143_v28  ;;  %v248_v33 = vsel %vm241_vm15, %v244_v31, %v247_v29 }
  0x6f   :  { %v145_v34 = vsel %vm135_vm1, nan, %v144_v32  ;;  %v249_v35 = vsel %vm135_vm1, nan, %v248_v33 }
  0x70   :  { %v251_v36 = vrot.slane %v145_v34, 2  ;;  %v255_v37 = vrot.slane %v249_v35, 2  ;;  %v259_v38 = vsub.f32 0.0, %v145_v34  ;;  %v261_v39 = vrot.slane %v145_v34, 3 }
  0x71   :  { %v264_v40 = vrot.slane %v249_v35, 3  ;;  %v269_v41 = vrot.slane %v145_v34, 6  ;;  %v272_v42 = vrot.slane %v249_v35, 6 }
  0x72   :  { %v253_v43 = vmul.f32 %v251_v36, %v145_v34  ;;  %v257_v44 = vmul.f32 %v255_v37, %v249_v35  ;;  %v258_v45 = vmul.f32 %v251_v36, %v249_v35  ;;  %v260_v46 = vmul.f32 %v259_v38, %v255_v37 }
  0x73   :  { %v263_v2 = vmul.f32 %v261_v39, %v145_v34  ;;  %v266_v47 = vmul.f32 %v264_v40, %v249_v35  ;;  %v267_v48 = vmul.f32 %v261_v39, %v249_v35  ;;  %v268_v49 = vmul.f32 %v264_v40, %v259_v38 }
  0x74   :  { %v271_v50 = vmul.f32 %v269_v41, %v145_v34  ;;  %v274_v51 = vmul.f32 %v272_v42, %v249_v35  ;;  %v275_v52 = vmul.f32 %v269_v41, %v249_v35  ;;  %v276_v53 = vmul.f32 %v272_v42, %v259_v38 }
  0x75   :  { %v278_v54 = vrot.slane %v263_v2, 6  ;;  %v282_v55 = vrot.slane %v266_v47, 6  ;;  %v314_v56 = vrot.slane %v267_v48, 6  ;;  %v318_v57 = vrot.slane %v268_v49, 6 }
  0x76   :  { %v792_v58 = vrot.slane %v271_v50, 7  ;;  %v794_v59 = vrot.slane %v274_v51, 7  ;;  %v796_v60 = vrot.slane %v275_v52, 7  ;;  %v798_v61 = vrot.slane %v276_v53, 7 }
  0x77   :  { %v280_v62 = vmul.f32 %v278_v54, %v253_v43  ;;  %v284_v63 = vmul.f32 %v282_v55, %v257_v44  ;;  %v286_v0 = vmul.f32 %v282_v55, %v253_v43  ;;  %v287_v1 = vmul.f32 %v278_v54, %v257_v44 }
  0x78   :  { %v316_v3 = vmul.f32 %v314_v56, %v253_v43  ;;  %v320_v4 = vmul.f32 %v318_v57, %v257_v44  ;;  %v322_v6 = vmul.f32 %v318_v57, %v253_v43  ;;  %v323_v7 = vmul.f32 %v314_v56, %v257_v44 }
  0x79   :  { %v285_v8 = vsub.f32 %v280_v62, %v284_v63  ;;  %v288_v9 = vadd.f32 %v287_v1, %v286_v0  ;;  %v337_v10 = vmul.f32 %v278_v54, %v258_v45  ;;  %v338_v11 = vmul.f32 %v282_v55, %v260_v46 }
  0x7a   :  { %v321_v12 = vsub.f32 %v316_v3, %v320_v4  ;;  %v324_v13 = vadd.f32 %v323_v7, %v322_v6  ;;  %v340_v14 = vmul.f32 %v282_v55, %v258_v45  ;;  %v341_v15 = vmul.f32 %v278_v54, %v260_v46 }
  0x7b   :  { %v298_v16 = vmul.f32 %v794_v59, %v285_v8  ;;  %v299_v17 = vmul.f32 %v792_v58, %v288_v9  ;;  %v310_v18 = vmul.f32 %v798_v61, %v285_v8  ;;  %v311_v19 = vmul.f32 %v796_v60, %v288_v9 }
  0x7c   :  { %v328_v20 = vmul.f32 %v321_v12, %v794_v59  ;;  %v329_v21 = vmul.f32 %v324_v13, %v792_v58  ;;  %v334_v22 = vmul.f32 %v321_v12, %v798_v61  ;;  %v335_v23 = vmul.f32 %v324_v13, %v796_v60 }
  0x7d   :  { %v300_v24 = vadd.f32 %v299_v17, %v298_v16  ;;  %v312_v25 = vadd.f32 %v311_v19, %v310_v18  ;;  %v339_v26 = vsub.f32 %v337_v10, %v338_v11  ;;  %v342_v27 = vadd.f32 %v341_v15, %v340_v14 }
  0x7e   :  { %v330_v5 = vadd.f32 %v329_v21, %v328_v20  ;;  %v336_v28 = vadd.f32 %v335_v23, %v334_v22  ;;  %v355_v29 = vmul.f32 %v314_v56, %v258_v45  ;;  %v356_v30 = vmul.f32 %v318_v57, %v260_v46 }
  0x7f   :  { %v346_v31 = vmul.f32 %v339_v26, %v794_v59  ;;  %v347_v32 = vmul.f32 %v342_v27, %v792_v58  ;;  %v352_v33 = vmul.f32 %v339_v26, %v798_v61  ;;  %v353_v34 = vmul.f32 %v342_v27, %v796_v60 }
  0x80   :  { %v357_v35 = vsub.f32 %v355_v29, %v356_v30  ;;  %v358_v36 = vmul.f32 %v318_v57, %v258_v45  ;;  %v359_v37 = vmul.f32 %v314_v56, %v260_v46  ;;  %v395_v38 = vrot.slane %v300_v24, 3 }
  0x81   :  { %v348_v39 = vadd.f32 %v347_v32, %v346_v31  ;;  %v354_v40 = vadd.f32 %v353_v34, %v352_v33  ;;  %v398_v41 = vrot.slane %v312_v25, 2  ;;  %v401_v42 = vrot.slane %v330_v5, 1 }
  0x82   :  { %v360_v43 = vadd.f32 %v359_v37, %v358_v36  ;;  %v364_v44 = vmul.f32 %v357_v35, %v794_v59  ;;  %v370_v2 = vmul.f32 %v357_v35, %v798_v61  ;;  %v292_v47 = vmul.f32 %v792_v58, %v285_v8 }
  0x83   :  { %v404_v48 = vrot.slane %v348_v39, 7  ;;  %v407_v49 = vrot.slane %v354_v40, 6  ;;  %v429_v50 = vsel %vm415_vm2, %v395_v38, %v398_v41  ;;  %v296_v45 = vmul.f32 %v794_v59, %v288_v9 }
  0x84   :  { %v365_v46 = vmul.f32 %v360_v43, %v792_v58  ;;  %v371_v51 = vmul.f32 %v360_v43, %v796_v60  ;;  %v430_v52 = vsel %vm417_vm3, %v429_v50, %v401_v42  ;;  %v304_v53 = vmul.f32 %v796_v60, %v285_v8  ;;  %v523_v42 = vld [vmem:[%s855_s2] sm:$0x3] }
  0x85   :  { %v431_v54 = vsel %vm419_vm4, %v430_v52, %v336_v28  ;;  %v297_v55 = vsub.f32 %v292_v47, %v296_v45  ;;  %v308_v56 = vmul.f32 %v798_v61, %v288_v9  ;;  %v325_v57 = vmul.f32 %v321_v12, %v792_v58 }
  0x86   :  { %v366_v62 = vadd.f32 %v365_v46, %v364_v44  ;;  %v372_v63 = vadd.f32 %v371_v51, %v370_v2  ;;  %v432_v0 = vsel %vm421_vm5, %v431_v54, %v404_v48  ;;  %v326_v1 = vmul.f32 %v324_v13, %v794_v59 }
  0x87   :  { %v433_v3 = vsel %vm423_vm6, %v432_v0, %v407_v49  ;;  %v309_v4 = vsub.f32 %v304_v53, %v308_v56  ;;  %v331_v6 = vmul.f32 %v321_v12, %v796_v60  ;;  %v332_v7 = vmul.f32 %v324_v13, %v798_v61 }
  0x88   :  { %v410_v8 = vrot.slane %v366_v62, 5  ;;  %v413_v10 = vrot.slane %v372_v63, 4  ;;  %v327_v11 = vsub.f32 %v325_v57, %v326_v1  ;;  %v343_v9 = vmul.f32 %v339_v26, %v792_v58 }
  0x89   :  { %v333_v14 = vsub.f32 %v331_v6, %v332_v7  ;;  %v344_v15 = vmul.f32 %v342_v27, %v794_v59  ;;  %v349_v16 = vmul.f32 %v339_v26, %v796_v60  ;;  %v350_v17 = vmul.f32 %v342_v27, %v798_v61 }
  0x8a   :  { %v434_v18 = vsel %vm425_vm7, %v433_v3, %v410_v8  ;;  %v361_v19 = vmul.f32 %v357_v35, %v792_v58  ;;  %v362_v12 = vmul.f32 %v360_v43, %v794_v59  ;;  %v367_v13 = vmul.f32 %v357_v35, %v796_v60  ;;  %v437_v35 = vld [vmem:[#allocation5 + $0x8] sm:$0xff] }
  0x8b   :  { %v435_v20 = vsel %vm427_vm8, %v434_v18, %v413_v10  ;;  %v345_v21 = vsub.f32 %v343_v9, %v344_v15  ;;  %v351_v22 = vsub.f32 %v349_v16, %v350_v17  ;;  %v368_v23 = vmul.f32 %v360_v43, %v798_v61 }
  0x8c   :  { %632 = vmatprep.subr.mxu0 %v435_v20  ;;  %v363_v24 = vsub.f32 %v361_v19, %v362_v12  ;;  %v374_v25 = vrot.slane %v297_v55, 3  ;;  %v377_v26 = vrot.slane %v309_v4, 2  ;;  %v380_v5 = vrot.slane %v327_v11, 1 }
  0x8d   :  { %633 = vmatpush3.msra.mxu0 %v435_v20  ;;  %v369_v27 = vsub.f32 %v367_v13, %v368_v23  ;;  %v383_v28 = vrot.slane %v345_v21, 7  ;;  %v386_v29 = vrot.slane %v351_v22, 6  ;;  %v741_v36 = vmov 0.0  }
  0x8e   :  { %v416_v58 = vsel %vm415_vm2, %v374_v25, %v377_v26  ;;  %v389_v59 = vrot.slane %v363_v24, 5  ;;  %639 = vmatprep.subr.mxu1 %v741_v36  ;;  %641 = vmatprep.mubr.msk.f32.mxu1 %vm742_vm9, %v741_v36 }
  0x8f   :  { %v418_v60 = vsel %vm417_vm3, %v416_v58, %v380_v5  ;;  %v392_v30 = vrot.slane %v369_v27, 4 }
  0x90   :  { %v420_v31 = vsel %vm419_vm4, %v418_v60, %v333_v14 }
  0x91   :  { %v422_v32 = vsel %vm421_vm5, %v420_v31, %v383_v28 }
  0x92   :  { %v424_v61 = vsel %vm423_vm6, %v422_v32, %v386_v29 }
  0x93   :  { %v426_v33 = vsel %vm425_vm7, %v424_v61, %v389_v59 }
  0x94   :  { %v428_v34 = vsel %vm427_vm8, %v426_v33, %v392_v30 }
  0x95   :  { %634 = vmatprep.subr.mxu0 %v428_v34 }
  0x96   :  { %635 = vmatpush3.msra.mxu0 %v428_v34 }
  0x97   :  { %637 = vmatmul.mubr.msk.f32.vlgmr.msra.gmra.mxu0 %vm438_vm0, %v437_v35 }
 0x157   :  { %v638_v37 = vpop.f32.mrf.mxu0 }
 0x158   :  { %v521_v39 = vmul.f32 %v638_v37, %v638_v37 }
 0x159   :  { %v511_v38 = vpop.f32.mrf.mxu0 }
 0x15a   :  { %v520_v40 = vmul.f32 %v511_v38, %v511_v38 }
 0x15c   :  { %v522_v41 = vadd.f32 %v521_v39, %v520_v40 }
 0x15e   :  { %640 = vmatpush3.msra.mxu1 %v522_v41 }
 0x15f   :  { %642 = vmatmul.mubr.msk.f32.vlgmr.msra.gmra.mxu1 %vm524_vm10, %v523_v42 }
 0x21f   :  { %v594_v43 = vpop.f32.mrf.mxu1 }
 0x220   :  { %598 = vst [vmem:[#allocation7] sm:$0x3] %v594_v43 }
 0x221   :  { %v643_v44 = vpop.f32.mrf.mxu1 }
 0x222   :  { %716 = shalt.err (!%p713_p0)
}
 0x223   :  { %608 = dma.vmem_to_hbm [thread:$0]  %s606_s25, 32, %s856_s3, [#allocation4]  }
 0x224   :  { %729 = dma.done.wait [#allocation4], 32  }
 0x225   :  { %730 = vsyncadd [#allocation4], 4294967264 }
 0x226   :  { %612 = vsyncpa [#allocation3], 1 }
 0x227   :  { %613 = vsyncpa [#allocation6], 1 }
 0x228   :  { %614 = vsyncpa [#allocation4], 1 }

</bundles_post_ra>
